<compile_context>
chip_gen: v6e
topology: v6e:2x2x1
jax: 0.10.0
libtpu: 0.0.40
codegen_flags: <defaults>
</compile_context>

<pallas_src>
import math
from dataclasses import dataclass
from typing import Optional, Tuple

import jax
import jax.numpy as jnp
from jax.experimental import pallas as pl
from jax.experimental.pallas import tpu as pltpu


NORMALIZATION_FACTOR = 10.0  # to_depth_meters


# ----------------------------------------------------------------------------
# Lightweight JAX ports of the dataclasses used by the module.
# ----------------------------------------------------------------------------
@dataclass
class CameraParameters:
    vertical_fov_radians: float
    features_spatial_dimensions: Tuple[int, int]  # (H, W)
    height_clip: float  # TODO(synk): height_clip is unused here; height filtering happens in a later stage.


class Pointcloud:
    """Pointcloud kept in structure-of-arrays (lane-dense) layout.

    .x / .heights / .z are zero-copy views of the kernel outputs.
    .xyz (P,3) and .batch_indices (P,) match the original torch Pointcloud fields but are
    materialized lazily on first access -- the (P,3) AoS layout costs an extra full
    read+write of the data, so it is deliberately not produced in the hot path.
    """

    def __init__(self, *, x, heights, z, num_batches, points_per_batch,
                 xyz=None, batch_indices=None):
        self._x = x
        self._heights = heights
        self._z = z
        self._n = int(num_batches)
        self._ppb = int(points_per_batch)
        self._xyz = xyz
        self._batch_indices = batch_indices

    def __len__(self):
        return self._x.shape[0]

    @property
    def x(self):
        return self._x

    @property
    def heights(self):
        return self._heights

    @property
    def z(self):
        return self._z

    @property
    def xyz(self):
        if self._xyz is None:
            self._xyz = jnp.stack([self._x, self._heights, self._z], axis=-1)  # (P, 3)
        return self._xyz

    @property
    def batch_indices(self):
        if self._batch_indices is None:
            self._batch_indices = jnp.repeat(
                jnp.arange(self._n, dtype=jnp.int32), self._ppb)
        return self._batch_indices


@dataclass
class State:
    pose: Optional[jnp.ndarray] = None       # (N, 3)
    elevation: Optional[jnp.ndarray] = None  # (N,)
    heading: Optional[jnp.ndarray] = None    # (N,)


def _transform3d(pose: jnp.ndarray, elevation: jnp.ndarray, heading: jnp.ndarray) -> jnp.ndarray:
    """(N,4,4) camera-to-world matrices (SMNet _transform3D construction).

    TODO(synk): the exact _transform3D source was not given with the spec; this is the
    standard SMNet construction (x-rotation by elevation, y-rotation by heading, translate
    by pose) that the mapper's PointCloud projector expects -- validate axis order/signs
    against the real implementation.
    """
    cx, sx = jnp.cos(elevation), jnp.sin(elevation)
    cy, sy = jnp.cos(heading), jnp.sin(heading)
    zeros = jnp.zeros_like(cx)
    ones = jnp.ones_like(cx)
    row0 = jnp.stack([cy, sx * sy, cx * sy, pose[:, 0]], axis=-1)
    row1 = jnp.stack([zeros, cx, -sx, pose[:, 1]], axis=-1)
    row2 = jnp.stack([-sy, cy * sx, cy * cx, pose[:, 2]], axis=-1)
    row3 = jnp.stack([zeros, zeros, zeros, ones], axis=-1)
    return jnp.stack([row0, row1, row2, row3], axis=1)  # (N, 4, 4)


class RobotCurrentState(State):
    @property
    def height(self):
        return self.pose[:, 1]

    def get_camera_matrix(self):
        return _transform3d(self.pose, self.elevation + jnp.pi, self.heading)


# ----------------------------------------------------------------------------
# Pallas kernel: fused depth->meters, pinhole unprojection, extrinsic transform.
# ----------------------------------------------------------------------------
def _unproject_kernel(t_ref, xs_ref, ys_ref, d_ref, ox_ref, oy_ref, oz_ref):
    # t_ref : (N, 12) f32 in SMEM -- rows 0..2 of the camera matrix; the rotation part
    #         already carries the *10 depth-normalization factor (folded in the wrapper).
    # xs_ref: (1, W)  resident per-column x scale
    # ys_ref: (TH, 1) per-row y scale chunk
    # d_ref : (TH, W) normalized-depth tile
    # o*_ref: (TH, W) world x / y / z tiles
    b = pl.program_id(0)
    xs = xs_ref[...]            # (1, W)
    ys = ys_ref[...]            # (TH, 1)
    d = d_ref[...]              # (TH, W)

    def plane(c0, c1, c2, c3):
        # w = d * (c0*xs + c1*ys + c2) + c3 ; camera-frame x,y never materialized.
        coef = (t_ref[b, c0] * xs) + (t_ref[b, c1] * ys + t_ref[b, c2])   # (TH, W)
        return d * coef + t_ref[b, c3]

    ox_ref[...] = plane(0, 1, 2, 3)      # world x
    oy_ref[...] = plane(4, 5, 6, 7)      # world y (heights)
    oz_ref[...] = plane(8, 9, 10, 11)    # world z


def _choose_row_tile(h: int, w: int, vmem_budget_bytes: int = 8 << 20) -> int:
    """Largest multiple-of-8 divisor of H whose per-step block footprint
    (depth + 3 outputs, double-buffered) fits the budget; capped so larger
    images keep >= ~4 pipeline steps along H."""
    if h % 8 != 0:
        return h  # full-extent block is always layout-legal; only tiny/ragged images land here
    bytes_per_row = w * 4 * 4 * 2                      # 4 f32 planes, double-buffered
    cap = max(8, (vmem_budget_bytes // bytes_per_row) // 8 * 8)
    if h >= 64:
        cap = min(cap, max(8, (h // 4) // 8 * 8))      # keep DMA/compute overlap
    best = 8
    th = 8
    while th <= min(h, cap):
        if h % th == 0:
            best = th
        th += 8
    return best


def _unproject_pallas(depth: jnp.ndarray, xs_row: jnp.ndarray, ys_col: jnp.ndarray,
                      t12: jnp.ndarray):
    """depth (N,H,W), xs_row (1,W), ys_col (H,1), t12 (N,12) -> (wx, wy, wz) each (N,H,W)."""
    n, h, w = depth.shape
    th = _choose_row_tile(h, w)
    grid = (n, h // th)
    out_sds = jax.ShapeDtypeStruct((n, h, w), jnp.float32)

    return pl.pallas_call(
        _unproject_kernel,
        out_shape=(out_sds, out_sds, out_sds),
        grid=grid,
        in_specs=[
            pl.BlockSpec(memory_space=pltpu.MemorySpace.SMEM),     # camera coeffs, scalar reads
            pl.BlockSpec((1, w), lambda b, r: (0, 0)),             # x scale row (resident)
            pl.BlockSpec((th, 1), lambda b, r: (r, 0)),            # y scale column chunk
            pl.BlockSpec((None, th, w), lambda b, r: (b, r, 0)),   # depth tile (batch squeezed)
        ],
        out_specs=(
            pl.BlockSpec((None, th, w), lambda b, r: (b, r, 0)),
            pl.BlockSpec((None, th, w), lambda b, r: (b, r, 0)),
            pl.BlockSpec((None, th, w), lambda b, r: (b, r, 0)),
        ),
        compiler_params=pltpu.CompilerParams(
            dimension_semantics=("parallel", "parallel"),
        ),
    )(t12, xs_row, ys_col, depth)


# ----------------------------------------------------------------------------
# Module wrapper.
# ----------------------------------------------------------------------------
class NormalizedDepthToPointcloudTransformation:
    """JAX/Pallas port of NormalizedDepthToPointcloudTransformation."""

    def __init__(self, camera_parameters: CameraParameters,
                 normalization_factor: float = NORMALIZATION_FACTOR):
        self.camera_parameters = camera_parameters
        self.normalization_factor = float(normalization_factor)

        # Equivalent of PointCloud.compute_scaling_params with
        #   K = [[W/(2 tan(vfov/2)), 0, W/2], [0, H/(2 tan(vfov/2)), H/2], [0, 0, 1]]
        #   x_scale = (u + 0.5 - cx)/fx,  y_scale = (v + 0.5 - cy)/fy
        # Batch-independent, precomputed once.
        # TODO(synk): verify sign conventions / aspect handling against the real
        # PointCloud.compute_scaling_params (this follows the SMNet reference projector).
        h, w = camera_parameters.features_spatial_dimensions
        self._h, self._w = int(h), int(w)
        tan_half = math.tan(camera_parameters.vertical_fov_radians / 2.0)
        u = jnp.arange(self._w, dtype=jnp.float32) + 0.5
        v = jnp.arange(self._h, dtype=jnp.float32) + 0.5
        self._xs_row = ((2.0 * u / self._w - 1.0) * tan_half).reshape(1, self._w)
        self._ys_col = ((2.0 * v / self._h - 1.0) * tan_half).reshape(self._h, 1)

        # Fold the *10 depth normalization into the rotation part of the extrinsic
        # (translation columns stay unscaled).
        nf = self.normalization_factor
        self._t12_scale = jnp.array([nf, nf, nf, 1.0] * 3, dtype=jnp.float32).reshape(1, 12)

    def __call__(self, depth_normalized, robot_current_state):
        return self.forward(depth_normalized, robot_current_state)

    def forward(self, depth_normalized: jnp.ndarray,
                robot_current_state: RobotCurrentState) -> Pointcloud:
        d = depth_normalized
        if d.ndim == 4:
            if d.shape[1] == 1:          # (N, 1, H, W)
                d = d[:, 0]
            elif d.shape[-1] == 1:       # (N, H, W, 1)
                d = d[..., 0]
        n, h, w = d.shape
        assert (h, w) == (self._h, self._w), "depth spatial dims must match camera parameters"
        p = h * w

        cam_t = robot_current_state.get_camera_matrix()                    # (N, 4, 4), tiny
        t12 = (cam_t[:, :3, :].reshape(n, 12) * self._t12_scale).astype(jnp.float32)

        wx, wy, wz = _unproject_pallas(d.astype(jnp.float32),
                                       self._xs_row, self._ys_col, t12)    # 3x (N, H, W)

        # Contiguous reshapes only -- no transpose; xyz/batch_indices materialize lazily.
        return Pointcloud(x=wx.reshape(n * p),
                          heights=wy.reshape(n * p),
                          z=wz.reshape(n * p),
                          num_batches=n, points_per_batch=p)


# ----------------------------------------------------------------------------
# Self-test.
# ----------------------------------------------------------------------------
if __name__ == "__main__":
    key = jax.random.PRNGKey(0)
    k_d, k_p, k_e, k_h = jax.random.split(key, 4)

    N, H, W = 2, 16, 16
    cam = CameraParameters(
        vertical_fov_radians=math.radians(79.0),
        features_spatial_dimensions=(H, W),
        height_clip=0.3,
    )

    depth_normalized = jax.random.uniform(k_d, (N, 1, H, W), dtype=jnp.float32)
    pose = jax.random.uniform(k_p, (N, 3), dtype=jnp.float32, minval=-5.0, maxval=5.0)
    elevation = jax.random.uniform(k_e, (N,), dtype=jnp.float32, minval=-0.3, maxval=0.3)
    heading = jax.random.uniform(k_h, (N,), dtype=jnp.float32, minval=-math.pi, maxval=math.pi)
    state = RobotCurrentState(pose=pose, elevation=elevation, heading=heading)

    module = NormalizedDepthToPointcloudTransformation(cam)
    pc = module(depth_normalized, state)
    jax.block_until_ready(pc.x)
    jax.block_until_ready(pc.heights)
    jax.block_until_ready(pc.z)

    # Pure-JAX reference of the same math.
    d = depth_normalized[:, 0]                                    # (N, H, W)
    T = state.get_camera_matrix()                                 # (N, 4, 4)
    dm = d * NORMALIZATION_FACTOR                                 # depth in meters
    xs = module._xs_row.reshape(1, 1, W)
    ys = module._ys_col.reshape(1, H, 1)
    x_c = (dm * xs).reshape(N, -1)
    y_c = (dm * ys).reshape(N, -1)
    z_c = dm.reshape(N, -1)
    ones = jnp.ones_like(z_c)
    pts = jnp.stack([x_c, y_c, z_c, ones], axis=1)                # (N, 4, HW)
    ref = jnp.einsum("nij,njp->nip", T, pts)[:, :3, :]            # (N, 3, HW)
    ref_x = ref[:, 0, :].reshape(-1)
    ref_y = ref[:, 1, :].reshape(-1)
    ref_z = ref[:, 2, :].reshape(-1)
    ref_xyz = jnp.stack([ref_x, ref_y, ref_z], axis=-1)
    ref_bidx = jnp.repeat(jnp.arange(N, dtype=jnp.int32), H * W)

    assert len(pc) == N * H * W
    assert pc.x.dtype == jnp.float32
    assert bool(jnp.allclose(pc.x, ref_x, rtol=1e-5, atol=1e-5))
    assert bool(jnp.allclose(pc.heights, ref_y, rtol=1e-5, atol=1e-5))
    assert bool(jnp.allclose(pc.z, ref_z, rtol=1e-5, atol=1e-5))

    # Lazy AoS materialization still matches the original Pointcloud contract.
    xyz = pc.xyz
    bidx = pc.batch_indices
    jax.block_until_ready(xyz)
    assert xyz.shape == (N * H * W, 3)
    assert bool(jnp.allclose(xyz, ref_xyz, rtol=1e-5, atol=1e-5))
    assert bidx.shape == (N * H * W,)
    assert bool(jnp.all(bidx == ref_bidx))

    print("KERNEL_OK")
</pallas_src>

<mosaic_0001>
module attributes {stable_mosaic.version = 11 : i64} {
  func.func @_unproject_kernel(%arg0: i32, %arg1: i32, %arg2: memref<2x12xf32, #tpu.memory_space<smem>>, %arg3: memref<1x16xf32, #tpu.memory_space<vmem>>, %arg4: memref<16x1xf32, #tpu.memory_space<vmem>>, %arg5: memref<1x16x16xf32, #tpu.memory_space<vmem>>, %arg6: memref<1x16x16xf32, #tpu.memory_space<vmem>>, %arg7: memref<1x16x16xf32, #tpu.memory_space<vmem>>, %arg8: memref<1x16x16xf32, #tpu.memory_space<vmem>>) attributes {dimension_semantics = [#tpu.dimension_semantics<parallel>, #tpu.dimension_semantics<parallel>], iteration_bounds = array<i64: 2, 1>, scalar_prefetch = 0 : i64, scratch_operands = 0 : i64, tpu.core_type = #tpu.core_type<tc>, window_params = [{transform_indices = @transform_0, window_bounds = array<i64: 2, 12>}, {pipeline_mode = #tpu.pipeline_mode<synchronous>, transform_indices = @transform_1, window_bounds = array<i64: 1, 16>}, {transform_indices = @transform_2, window_bounds = array<i64: 16, 1>}, {transform_indices = @transform_3, window_bounds = array<i64: 1, 16, 16>}, {transform_indices = @transform_4, window_bounds = array<i64: 1, 16, 16>}, {transform_indices = @transform_5, window_bounds = array<i64: 1, 16, 16>}, {transform_indices = @transform_6, window_bounds = array<i64: 1, 16, 16>}]} {
    %c0 = arith.constant 0 : index
    %c0_0 = arith.constant 0 : index
    %0 = vector.load %arg3[%c0, %c0_0] : memref<1x16xf32, #tpu.memory_space<vmem>>, vector<1x16xf32>
    %c0_1 = arith.constant 0 : index
    %c0_2 = arith.constant 0 : index
    %1 = vector.load %arg4[%c0_1, %c0_2] : memref<16x1xf32, #tpu.memory_space<vmem>>, vector<16x1xf32>
    %c0_3 = arith.constant 0 : index
    %c0_4 = arith.constant 0 : index
    %c0_5 = arith.constant 0 : index
    %2 = vector.load %arg5[%c0_3, %c0_4, %c0_5] : memref<1x16x16xf32, #tpu.memory_space<vmem>>, vector<1x16x16xf32>
    %3 = vector.shape_cast %2 : vector<1x16x16xf32> to vector<16x16xf32>
    %4 = arith.index_cast %arg0 : i32 to index
    %c0_6 = arith.constant 0 : index
    %5 = memref.load %arg2[%4, %c0_6] : memref<2x12xf32, #tpu.memory_space<smem>>
    %6 = vector.broadcast %5 : f32 to vector<1x16xf32>
    %7 = arith.mulf %6, %0 : vector<1x16xf32>
    %8 = arith.index_cast %arg0 : i32 to index
    %c1 = arith.constant 1 : index
    %9 = memref.load %arg2[%8, %c1] : memref<2x12xf32, #tpu.memory_space<smem>>
    %10 = vector.broadcast %9 : f32 to vector<16x1xf32>
    %11 = arith.mulf %10, %1 : vector<16x1xf32>
    %12 = arith.index_cast %arg0 : i32 to index
    %c2 = arith.constant 2 : index
    %13 = memref.load %arg2[%12, %c2] : memref<2x12xf32, #tpu.memory_space<smem>>
    %14 = vector.broadcast %13 : f32 to vector<16x1xf32>
    %15 = arith.addf %11, %14 : vector<16x1xf32>
    %16 = vector.broadcast %7 : vector<1x16xf32> to vector<16x16xf32>
    %17 = vector.broadcast %15 : vector<16x1xf32> to vector<16x16xf32>
    %18 = arith.addf %16, %17 : vector<16x16xf32>
    %19 = arith.mulf %3, %18 : vector<16x16xf32>
    %20 = arith.index_cast %arg0 : i32 to index
    %c3 = arith.constant 3 : index
    %21 = memref.load %arg2[%20, %c3] : memref<2x12xf32, #tpu.memory_space<smem>>
    %22 = vector.broadcast %21 : f32 to vector<16x16xf32>
    %23 = arith.addf %19, %22 : vector<16x16xf32>
    %c0_7 = arith.constant 0 : index
    %c0_8 = arith.constant 0 : index
    %c0_9 = arith.constant 0 : index
    %24 = vector.load %arg6[%c0_7, %c0_8, %c0_9] : memref<1x16x16xf32, #tpu.memory_space<vmem>>, vector<1x16x16xf32>
    %25 = vector.shape_cast %24 : vector<1x16x16xf32> to vector<16x16xf32>
    %26 = vector.shape_cast %23 : vector<16x16xf32> to vector<1x16x16xf32>
    tpu.vector_store %arg6[%c0_7, %c0_8, %c0_9], %26 {strides = array<i32>} : memref<1x16x16xf32, #tpu.memory_space<vmem>>, vector<1x16x16xf32>,
    %27 = arith.index_cast %arg0 : i32 to index
    %c4 = arith.constant 4 : index
    %28 = memref.load %arg2[%27, %c4] : memref<2x12xf32, #tpu.memory_space<smem>>
    %29 = vector.broadcast %28 : f32 to vector<1x16xf32>
    %30 = arith.mulf %29, %0 : vector<1x16xf32>
    %31 = arith.index_cast %arg0 : i32 to index
    %c5 = arith.constant 5 : index
    %32 = memref.load %arg2[%31, %c5] : memref<2x12xf32, #tpu.memory_space<smem>>
    %33 = vector.broadcast %32 : f32 to vector<16x1xf32>
    %34 = arith.mulf %33, %1 : vector<16x1xf32>
    %35 = arith.index_cast %arg0 : i32 to index
    %c6 = arith.constant 6 : index
    %36 = memref.load %arg2[%35, %c6] : memref<2x12xf32, #tpu.memory_space<smem>>
    %37 = vector.broadcast %36 : f32 to vector<16x1xf32>
    %38 = arith.addf %34, %37 : vector<16x1xf32>
    %39 = vector.broadcast %30 : vector<1x16xf32> to vector<16x16xf32>
    %40 = vector.broadcast %38 : vector<16x1xf32> to vector<16x16xf32>
    %41 = arith.addf %39, %40 : vector<16x16xf32>
    %42 = arith.mulf %3, %41 : vector<16x16xf32>
    %43 = arith.index_cast %arg0 : i32 to index
    %c7 = arith.constant 7 : index
    %44 = memref.load %arg2[%43, %c7] : memref<2x12xf32, #tpu.memory_space<smem>>
    %45 = vector.broadcast %44 : f32 to vector<16x16xf32>
    %46 = arith.addf %42, %45 : vector<16x16xf32>
    %c0_10 = arith.constant 0 : index
    %c0_11 = arith.constant 0 : index
    %c0_12 = arith.constant 0 : index
    %47 = vector.load %arg7[%c0_10, %c0_11, %c0_12] : memref<1x16x16xf32, #tpu.memory_space<vmem>>, vector<1x16x16xf32>
    %48 = vector.shape_cast %47 : vector<1x16x16xf32> to vector<16x16xf32>
    %49 = vector.shape_cast %46 : vector<16x16xf32> to vector<1x16x16xf32>
    tpu.vector_store %arg7[%c0_10, %c0_11, %c0_12], %49 {strides = array<i32>} : memref<1x16x16xf32, #tpu.memory_space<vmem>>, vector<1x16x16xf32>,
    %50 = arith.index_cast %arg0 : i32 to index
    %c8 = arith.constant 8 : index
    %51 = memref.load %arg2[%50, %c8] : memref<2x12xf32, #tpu.memory_space<smem>>
    %52 = vector.broadcast %51 : f32 to vector<1x16xf32>
    %53 = arith.mulf %52, %0 : vector<1x16xf32>
    %54 = arith.index_cast %arg0 : i32 to index
    %c9 = arith.constant 9 : index
    %55 = memref.load %arg2[%54, %c9] : memref<2x12xf32, #tpu.memory_space<smem>>
    %56 = vector.broadcast %55 : f32 to vector<16x1xf32>
    %57 = arith.mulf %56, %1 : vector<16x1xf32>
    %58 = arith.index_cast %arg0 : i32 to index
    %c10 = arith.constant 10 : index
    %59 = memref.load %arg2[%58, %c10] : memref<2x12xf32, #tpu.memory_space<smem>>
    %60 = vector.broadcast %59 : f32 to vector<16x1xf32>
    %61 = arith.addf %57, %60 : vector<16x1xf32>
    %62 = vector.broadcast %53 : vector<1x16xf32> to vector<16x16xf32>
    %63 = vector.broadcast %61 : vector<16x1xf32> to vector<16x16xf32>
    %64 = arith.addf %62, %63 : vector<16x16xf32>
    %65 = arith.mulf %3, %64 : vector<16x16xf32>
    %66 = arith.index_cast %arg0 : i32 to index
    %c11 = arith.constant 11 : index
    %67 = memref.load %arg2[%66, %c11] : memref<2x12xf32, #tpu.memory_space<smem>>
    %68 = vector.broadcast %67 : f32 to vector<16x16xf32>
    %69 = arith.addf %65, %68 : vector<16x16xf32>
    %c0_13 = arith.constant 0 : index
    %c0_14 = arith.constant 0 : index
    %c0_15 = arith.constant 0 : index
    %70 = vector.load %arg8[%c0_13, %c0_14, %c0_15] : memref<1x16x16xf32, #tpu.memory_space<vmem>>, vector<1x16x16xf32>
    %71 = vector.shape_cast %70 : vector<1x16x16xf32> to vector<16x16xf32>
    %72 = vector.shape_cast %69 : vector<16x16xf32> to vector<1x16x16xf32>
    tpu.vector_store %arg8[%c0_13, %c0_14, %c0_15], %72 {strides = array<i32>} : memref<1x16x16xf32, #tpu.memory_space<vmem>>, vector<1x16x16xf32>,
    return
  }
  func.func @transform_0(%arg0: i32, %arg1: i32) -> (i32, i32) {
    %c0_i32 = arith.constant 0 : i32
    %c0_i32_0 = arith.constant 0 : i32
    %c0_i32_1 = arith.constant 0 : i32
    return %c0_i32, %c0_i32_0 : i32, i32
  }
  func.func @transform_1(%arg0: i32, %arg1: i32) -> (i32, i32) {
    %c0_i32 = arith.constant 0 : i32
    %c0_i32_0 = arith.constant 0 : i32
    %c0_i32_1 = arith.constant 0 : i32
    return %c0_i32, %c0_i32_0 : i32, i32
  }
  func.func @transform_2(%arg0: i32, %arg1: i32) -> (i32, i32) {
    %c0_i32 = arith.constant 0 : i32
    %c0_i32_0 = arith.constant 0 : i32
    return %arg1, %c0_i32 : i32, i32
  }
  func.func @transform_3(%arg0: i32, %arg1: i32) -> (i32, i32, i32) {
    %c0_i32 = arith.constant 0 : i32
    %c0_i32_0 = arith.constant 0 : i32
    return %arg0, %arg1, %c0_i32 : i32, i32, i32
  }
  func.func @transform_4(%arg0: i32, %arg1: i32) -> (i32, i32, i32) {
    %c0_i32 = arith.constant 0 : i32
    %c0_i32_0 = arith.constant 0 : i32
    return %arg0, %arg1, %c0_i32 : i32, i32, i32
  }
  func.func @transform_5(%arg0: i32, %arg1: i32) -> (i32, i32, i32) {
    %c0_i32 = arith.constant 0 : i32
    %c0_i32_0 = arith.constant 0 : i32
    return %arg0, %arg1, %c0_i32 : i32, i32, i32
  }
  func.func @transform_6(%arg0: i32, %arg1: i32) -> (i32, i32, i32) {
    %c0_i32 = arith.constant 0 : i32
    %c0_i32_0 = arith.constant 0 : i32
    return %arg0, %arg1, %c0_i32 : i32, i32, i32
  }
}

</mosaic_0001>

<bundles_post_ra>
// kernel: tpu_custom_call.1
= control target key start
LH: loop header
LB: loop body
LE: loop exit
PB: predicated region body
PF: predicated region fallthrough
CT: control target
= control target key end

     0   :  { %s1403_s0 = inlined_call_operand.vmem [shape: f32[2,12], index: 0, kind: input, shape index: {}]   ;;  %s1404_s1 = inlined_call_operand.vmem [shape: f32[1,16], index: 1, kind: input, shape index: {}]   ;;  %s1405_s2 = inlined_call_operand.vmem [shape: f32[16,1], index: 2, kind: input, shape index: {}]   ;;  %s1406_s3 = inlined_call_operand.hbm [shape: f32[2,16,16], index: 3, kind: input, shape index: {}]   ;;  %s1407_s4 = inlined_call_operand.hbm [shape: f32[2,16,16], index: 4, kind: output, shape index: {0}]   ;;  %s1408_s5 = inlined_call_operand.hbm [shape: f32[2,16,16], index: 5, kind: output, shape index: {1}]   ;;  %s1409_s6 = inlined_call_operand.hbm [shape: f32[2,16,16], index: 6, kind: output, shape index: {2}]  }
   0x1   :  { %1417 = sst [smem:[#allocation19_spill]] %s1403_s0 }
   0x2   :  { %1418 = sst [smem:[#allocation20_spill]] %s1406_s3 }
   0x3   :  { %12 = vsyncpa [#allocation5], 0 }
   0x4   :  { %13 = vsyncpa [#allocation3], 0 }
   0x5   :  { %15 = vsyncpa [#allocation3 + $0x1], 0 }
   0x6   :  { %16 = vsyncpa [#allocation4], 0 }
   0x7   :  { %18 = vsyncpa [#allocation4 + $0x1], 0 }
   0x8   :  { %19 = vsyncpa [#allocation9], 0 }
   0x9   :  { %21 = vsyncpa [#allocation9 + $0x1], 0  ;;  %s1073_s21 = smov 0   ;;  %s1075_s22 = smov 0  }
   0xa   :  { %s1077_s23 = smov 0   ;;  %s1079_s24 = smov 0  }
   0xb   :  { %s1081_s25 = smov 0   ;;  %s1083_s26 = smov 0  }
   0xc LB: > { %1419 = sst [smem:[#allocation15_spill]] %s1006_s21  ;;  %s1104_s27 = sadd.s32 4294967295, %s1026_s26   ;;  %s1026_s26 = sphi %s1083_s26, %s27_s26   ;;  %s1022_s25 = sphi %s1081_s25, %s1448_s25   ;;  %s1018_s24 = sphi %s1079_s24, %s1447_s24   ;;  %s1014_s23 = sphi %s1077_s23, %s1446_s23   ;;  %s1010_s22 = sphi %s1075_s22, %s1445_s22   ;;  %s1006_s21 = sphi %s1073_s21, %s1444_s21  }
   0xd   : > { %1420 = sst [smem:[#allocation16_spill]] %s1026_s26  ;;  %s1411_s28 = sadd.s32 4294967294, %s1026_s26  }
   0xe   : > { %p123_p0 = scmp.ne.s32.totalorder %s1014_s23, %s1010_s22  ;;  %p124_p1 = scmp.eq.s32.totalorder %s1026_s26, 0 }
   0xf   : > { %p129_p2 = scmp.ne.s32.totalorder %s1010_s22, %s1006_s21  ;;  %p130_p3 = scmp.eq.s32.totalorder %s1104_s27, 0 }
  0x10   : > { %p155_p4 = scmp.eq.s32.totalorder %s1104_s27, 1  ;;  %p1115_p5 = por %p124_p1, %p123_p0 }
  0x11   : > { %p161_p6 = scmp.eq.s32.totalorder %s1411_s28, 1  ;;  %p1123_p7 = por %p130_p3, %p129_p2 }
  0x12   : > { %p1127_p8 = por %p155_p4, %p123_p0  ;;  %p724_p10 = scmp.ge.s32.totalorder %s1026_s26, 1 }
  0x13   : > { %p1131_p9 = por %p161_p6, %p129_p2  ;;  %p224_p11 = scmp.lt.s32.totalorder %s1026_s26, 3 }
  0x14   : > { %s1423_s8 = scalar_select %p1127_p8, 1, 0 }
  0x15   : > { %s1424_s9 = scalar_select %p1131_p9, 1, 0 }
  0x16   : > { %s1426_s0 = sld [smem:[#allocation19_spill]]  ;;  %p1140_p12 = pnand %p724_p10, %p224_p11 }
  0x17   : > { %1425 = sst [smem:[#allocation17_spill]] %s1424_s9  ;;  %p784_p0 = scmp.lt.s32.totalorder %s1026_s26, 2 }
  0x18   : > { %p765_p1 = pneg %p1140_p12  ;;  %s39_s16 = sadd.s32 1, %s1022_s25 }
  0x19   : > { %p1150_p2 = pnand %p784_p0, %p1115_p5  ;;  %p1161_p6 = scmp.ge.s32.totalorder %s39_s16, 2 }
  0x1a   : > { %p1156_p4 = pnand %p765_p1, %p130_p3  ;;  %s260_s18 = sand.u32 1, %s1014_s23  }
  0x1c   : > { %s237_s12 = sshll.u32 %s1426_s0, 4  ;;  %p845_p11 = pneg %p1156_p4  ;;  %s238_s12 = int_to_ptr.vmem [resolvable:$true] %s237_s12 }
  0x1d   : > { %s843_s19 = scalar_lea.vmem %s238_s12, 32  ;;  %p851_p13 = scmp.lt.s32.totalorder %s238_s12, %s238_s12 }
  0x1e   : > { %p844_p10 = scmp.ne.s32.totalorder %s238_s12, %s843_s19  ;;  %p852_p9 = scmp.lt.s32.totalorder %s843_s19, %s843_s19 }
  0x20   : > { %p846_p5 = pnand %p845_p11, %p844_p10  ;;  %p853_p8 = por %p852_p9, %p851_p13 }
  0x22   : > { %p847_p0 = pneg %p846_p5 }
  0x24   : > { %p854_p1 = pnand %p853_p8, %p847_p0 }
  0x26   : > { %857 = shalt.err (!%p854_p1)
}
  0x27   : > { %s1028_s20 = smov [#allocation2]   ;;  %s1450_s16 = smov (%p1161_p6, %s39_s16), 0 }
  0x28   : > { %768 = dma.vmem_to_smem (!%p1156_p4), %s238_s12, 32, %s1028_s20, [#allocation5]  }
  0x29   : > { %1431 = sst [smem:[#allocation18_spill]] %s1450_s16  ;;  %s728_s30 = sshll.u32 %s260_s18, 4 }
  0x2a   : > { %s111_s10 = ssub.s32 %s1022_s25, %s1450_s16  ;;  %s749_s11 = sshll.u32 %s1022_s25, 8 }
  0x2b   : > { %p114_p10 = scmp.eq.s32.totalorder %s111_s10, 0  ;;  %s1432_s3 = sld [smem:[#allocation20_spill]] }
  0x2c   : > { %s264_s15 = scalar_lea.vmem [#allocation6], %s728_s30  ;;  %s1433_s26 = sadd.s32 1, %s1014_s23 }
  0x2d   : > { %s273_s0 = sshll.u32 %s264_s15, 4  ;;  %s261_s21 = scalar_lea.sflag [#allocation3], %s260_s18  ;;  %s274_s0 = int_to_ptr.vmem [resolvable:$true] %s273_s0 }
  0x2e   : > { %s1183_s9 = scalar_select %p114_p10, %s1014_s23, %s1433_s26  }
  0x2f   : > { %p860_p8 = pneg %p1150_p2  ;;  %s871_s12 = scalar_lea.vmem %s274_s0, 256 }
  0x30   : > { %p872_p9 = scmp.ne.s32.totalorder %s274_s0, %s871_s12  ;;  %s1029_s17 = smov [#allocation6]  }
  0x31   : > { %s272_s29 = scalar_lea.hbm %s1432_s3, %s749_s11  ;;  %s876_s20 = sshll.u32 %s1029_s17, 4  ;;  %s877_s20 = int_to_ptr.vmem [resolvable:$false] %s876_s20 }
  0x32   : > { %p874_p13 = pnand %p872_p9, %p860_p8  ;;  %s878_s10 = scalar_lea.vmem %s877_s20, 512 }
  0x33   : > { %p879_p6 = scmp.lt.s32.totalorder %s274_s0, %s877_s20  ;;  %p880_p11 = scmp.lt.s32.totalorder %s878_s10, %s871_s12 }
  0x34   : > { %p875_p4 = pneg %p874_p13 }
  0x35   : > { %p881_p5 = por %p880_p11, %p879_p6 }
  0x37   : > { %p882_p0 = pnand %p881_p5, %p875_p4 }
  0x39   : > { %885 = shalt.err (!%p882_p0)
}
  0x3a   : > { %s1030_s28 = smov 128   ;;  %s1031_s26 = smov 8  }
  0x3b   : > { %772 = dma.hbm_to_vmem [thread:$0]  (!%p1150_p2), %s272_s29, 256, %s274_s0, %s261_s21, %s1030_s28, %s1030_s28, %s1031_s26  }
  0x3c   : > { %285 = sbr.rel (%p1140_p12) target bundleno = 282 (0x11a), region = 36 }
  0x41   : > { %989 = dma.done.wait (%p130_p3), [#allocation5], 32  }
  0x42   : > { %991 = vsyncadd (%p130_p3), [#allocation5], 4294967264  ;;  %s1196_s18 = sand.u32 1, %s1010_s22  }
  0x43   : > { %s1199_s30 = sshll.u32 %s1196_s18, 4  ;;  %s292_s14 = scalar_lea.sflag [#allocation3], %s1196_s18 }
  0x44   : > { %993 = dma.done.wait (%p1123_p7), %s292_s14, 256  }
  0x45   : > { %995 = vsyncadd (%p1123_p7), %s292_s14, 4294967040 }
  0x46   : > { %300 = sfence }
  0x47   : > { %s1208_s21 = sshll.u32 %s1018_s24, 7  ;;  %v1032_v0 = vmov 0   ;;  %v351_v1 = vld [vmem:[%s1405_s2] sm:$0xff]  ;;  %v352_v2 = vld [vmem:[%s1405_s2 + $0x8] sm:$0xff]  ;;  %v370_v21 = vlaneseq  ;;  %vm394_vm0 = vcmask 130048   ;;  %s1247_s14 = sshll.u32 %s1018_s24, 8 }
  0x48   : > { %842 = vset.pattern.permute.xlu1 %v1032_v0  ;;  %841 = vset.pattern.permute.xlu0 %v1032_v0  ;;  %s401_s29 = sadd.s32 5, %s1208_s21  ;;  %s406_s13 = sadd.s32 6, %s1208_s21  ;;  %v350_v24 = vld [vmem:[%s1404_s1] sm:$0x1] }
  0x49   : > { %s402_s11 = sld [smem:[#allocation2 + %s401_s29]]  ;;  %s359_s19 = sadd.s32 1, %s1208_s21  ;;  %v371_v22 = vshrl.u32 %v370_v21, 7 }
  0x4a   : > { %s407_s15 = sld [smem:[#allocation2 + %s406_s13]]  ;;  %s364_s7 = sadd.s32 2, %s1208_s21 }
  0x4b   : > { %s360_s12 = sld [smem:[#allocation2 + %s359_s19]]  ;;  %s442_s17 = sadd.s32 9, %s1208_s21  ;;  %v372_v26 = vsub.s32 0, %v371_v22 }
  0x4c   : > { %s365_s20 = sld [smem:[#allocation2 + %s364_s7]]  ;;  %s447_s10 = sadd.s32 10, %s1208_s21 }
  0x4d   : > { %s443_s3 = sld [smem:[#allocation2 + %s442_s17]]  ;;  %s397_s0 = sadd.s32 4, %s1208_s21 }
  0x4e   : > { %s448_s16 = sld [smem:[#allocation2 + %s447_s10]]  ;;  %s438_s13 = sadd.s32 8, %s1208_s21 }
  0x4f   : > { %v403_v3 = vstv %s402_s11  ;;  %s356_s29 = sld [smem:[#allocation2 + %s1208_s21]]  ;;  %s389_s7 = sadd.s32 3, %s1208_s21 }
  0x50   : > { %v404_v4 = vmul.f32 %v403_v3, %v351_v1  ;;  %v405_v5 = vmul.f32 %v403_v3, %v352_v2  ;;  %v408_v6 = vstv %s407_s15  ;;  %s439_s19 = sld [smem:[#allocation2 + %s438_s13]]  ;;  %s431_s15 = sadd.s32 7, %s1208_s21 }
  0x51   : > { %v361_v7 = vstv %s360_s12  ;;  %s1230_s12 = sld [smem:[#allocation2 + %s431_s15]]  ;;  %s1434_s10 = scalar_lea.vmem [#allocation6], %s1199_s30 }
  0x52   : > { %v409_v8 = vadd.f32 %v408_v6, %v404_v4  ;;  %v362_v9 = vmul.f32 %v361_v7, %v351_v1  ;;  %v363_v10 = vmul.f32 %v361_v7, %v352_v2  ;;  %v366_v11 = vstv %s365_s20  ;;  %s1232_s17 = sld [smem:[#allocation2 + %s389_s7]]  ;;  %s472_s20 = sadd.s32 11, %s1208_s21  ;;  %v353_v32 = vld [vmem:[%s1434_s10] sm:$0xff] }
  0x53   : > { %v444_v12 = vstv %s443_s3  ;;  %v410_v13 = vadd.f32 %v408_v6, %v405_v5  ;;  %s398_s3 = sld [smem:[#allocation2 + %s397_s0]]  ;;  %s1435_s26 = smov %s1434_s10 }
  0x54   : > { %419 = vperm.xlu0 %841, %v409_v8   ;;  %v367_v14 = vadd.f32 %v366_v11, %v362_v9  ;;  %v445_v15 = vmul.f32 %v444_v12, %v351_v1  ;;  %v449_v16 = vstv %s448_s16  ;;  %v368_v17 = vadd.f32 %v366_v11, %v363_v10  ;;  %s1238_s28 = sld [smem:[#allocation2 + %s472_s20]]  ;;  %v1243_v41 = vld [vmem:[%s1435_s26 + $0x8] sm:$0xff]  ;;  %s484_s21 = sand.u32 1, %s1104_s27  }
  0x55   : > { %v446_v18 = vmul.f32 %v444_v12, %v352_v2  ;;  %v357_v25 = vstv %s356_s29  ;;  %s332_s0 = scalar_lea.vmem [#allocation8], %s1199_s30  ;;  %s1253_s29 = scalar_lea.vmem [#allocation7], %s1199_s30 }
  0x56   : > { %377 = vperm.xlu1 %842, %v367_v14   ;;  %v450_v19 = vadd.f32 %v449_v16, %v445_v15  ;;  %v358_v28 = vmul.f32 %v357_v25, %v350_v24  ;;  %v440_v30 = vstv %s439_s19  ;;  %s505_s13 = sshll.u32 %s1253_s29, 4  ;;  %s1263_s11 = scalar_lea.hbm %s1408_s5, %s1247_s14  ;;  %s1279_s13 = int_to_ptr.vmem [resolvable:$true] %s505_s13 }
  0x57   : > { %v451_v20 = vadd.f32 %v449_v16, %v446_v18  ;;  %v441_v35 = vmul.f32 %v440_v30, %v350_v24  ;;  %v433_v36 = vstv %s1230_s12  ;;  %s1269_s19 = scalar_lea.vmem [#allocation10], %s1199_s30  ;;  %s1283_s20 = scalar_lea.sflag [#allocation9], %s484_s21 }
  0x58   : > { %424 = vperm.xlu0 %841, %v410_v13   ;;  %v373_v31 = vrot.slane %v358_v28, %v372_v26  ;;  %v391_v40 = vstv %s1232_s17  ;;  %s541_s15 = sshll.u32 %s1269_s19, 4  ;;  %s1277_s17 = scalar_lea.hbm %s1407_s4, %s1247_s14  ;;  %s1342_s15 = int_to_ptr.vmem [resolvable:$true] %s541_s15 }
  0x59   : > { %v399_v23 = vstv %s398_s3  ;;  %v456_v46 = vrot.slane %v441_v35, %v372_v26  ;;  %s523_s3 = sshll.u32 %s332_s0, 4  ;;  %p1436_p7 = scmp.ne.s32.totalorder %s1423_s8, 0  ;;  %s1265_s3 = int_to_ptr.vmem [resolvable:$true] %s523_s3 }
  0x5a   : > { %382 = vperm.xlu1 %842, %v368_v17   ;;  %v400_v27 = vmul.f32 %v399_v23, %v350_v24  ;;  %v474_v55 = vstv %s1238_s28  ;;  %s886_s30 = scalar_lea.vmem %s1265_s3, 256  ;;  %s1033_s10 = smov [#allocation8]  }
  0x5b   : > { %p887_p3 = scmp.ne.s32.totalorder %s1265_s3, %s886_s30  ;;  %s890_s26 = sshll.u32 %s1033_s10, 4  ;;  %s891_s26 = int_to_ptr.vmem [resolvable:$false] %s890_s26 }
  0x5c   : > { %460 = vperm.xlu0 %841, %v450_v19   ;;  %v415_v29 = vrot.slane %v400_v27, %v372_v26  ;;  %p893_p1 = scmp.lt.s32.totalorder %s1265_s3, %s891_s26 }
  0x5d   : > { %p888_p12 = pnand %p887_p3, %p1436_p7 }
  0x5e   : > { %465 = vperm.xlu1 %842, %v451_v20  }
  0x5f   : > { %p889_p2 = pneg %p888_p12 }
  0xcf   : > { %v420_v33 = vpop.permute.xlu0 %419 }
  0xd0   : > { %v427_v34 = vadd.f32 %v420_v33, %v415_v29 }
  0xd1   : > { %v378_v37 = vpop.permute.xlu1 %377 }
  0xd2   : > { %v429_v38 = vmul.f32 %v427_v34, %v353_v32  ;;  %v385_v39 = vadd.f32 %v378_v37, %v373_v31 }
  0xd3   : > { %v425_v42 = vpop.permute.xlu0 %424 }
  0xd4   : > { %v434_v43 = vadd.f32 %v433_v36, %v429_v38  ;;  %v387_v44 = vmul.f32 %v385_v39, %v353_v32  ;;  %v428_v45 = vadd.f32 %v425_v42, %v415_v29 }
  0xd5   : > { %v383_v47 = vpop.permute.xlu1 %382 }
  0xd6   : > { %436 = vst.msk [vmem:[%s332_s0] sm:$0xff] %vm394_vm0, %v434_v43  ;;  %v392_v48 = vadd.f32 %v391_v40, %v387_v44  ;;  %v430_v49 = vmul.f32 %v428_v45, %v1243_v41  ;;  %v386_v50 = vadd.f32 %v383_v47, %v373_v31 }
  0xd7   : > { %v461_v51 = vpop.permute.xlu0 %460 }
  0xd8   : > { %395 = vst.msk [vmem:[%s1253_s29] sm:$0xff] %vm394_vm0, %v392_v48  ;;  %v435_v52 = vadd.f32 %v433_v36, %v430_v49  ;;  %v388_v53 = vmul.f32 %v386_v50, %v1243_v41  ;;  %v468_v54 = vadd.f32 %v461_v51, %v456_v46 }
  0xd9   : > { %v466_v56 = vpop.permute.xlu1 %465 }
  0xda   : > { %437 = vst.msk [vmem:[%s332_s0 + $0x8] sm:$0xff] %vm394_vm0, %v435_v52  ;;  %v393_v57 = vadd.f32 %v391_v40, %v388_v53  ;;  %v470_v58 = vmul.f32 %v468_v54, %v353_v32  ;;  %v469_v59 = vadd.f32 %v466_v56, %v456_v46  ;;  %s892_s0 = scalar_lea.vmem %s891_s26, 512 }
  0xdb   : > { %p894_p10 = scmp.lt.s32.totalorder %s892_s0, %s886_s30 }
  0xdd   : > { %p895_p8 = por %p894_p10, %p893_p1 }
  0xdf   : > { %p896_p9 = pnand %p895_p8, %p889_p2 }
  0xe1   : > { %899 = shalt.err (!%p896_p9)
}
  0xe2   : > { %s900_s27 = scalar_lea.hbm %s1263_s11, 256  ;;  %s904_s16 = scalar_lea.hbm %s1408_s5, 512 }
  0xe3   : > { %p901_p13 = scmp.ne.s32.totalorder %s1263_s11, %s900_s27  ;;  %p905_p11 = scmp.lt.s32.totalorder %s1263_s11, %s1408_s5 }
  0xe4   : > { %p906_p5 = scmp.lt.s32.totalorder %s904_s16, %s900_s27 }
  0xe5   : > { %p902_p4 = pnand %p901_p13, %p1436_p7 }
  0xe6   : > { %p907_p0 = por %p906_p5, %p905_p11 }
  0xe7   : > { %p903_p6 = pneg %p902_p4 }
  0xe9   : > { %p908_p3 = pnand %p907_p0, %p903_p6 }
  0xeb   : > { %911 = shalt.err (!%p908_p3)
}
  0xec   : > { %s1034_s30 = smov 128   ;;  %s1035_s10 = smov 8   ;;  %396 = vst.msk [vmem:[%s1253_s29 + $0x8] sm:$0xff] %vm394_vm0, %v393_v57  ;;  %v475_v60 = vadd.f32 %v474_v55, %v470_v58  ;;  %v471_v61 = vmul.f32 %v469_v59, %v1243_v41 }
  0xed   : > { %760 = dma.vmem_to_hbm [thread:$0]  (%p1436_p7), %s1265_s3, 256, %s1263_s11, %s1283_s20, %s1034_s30, %s1034_s30, %s1035_s10  }
  0xee   : > { %s480_s26 = scalar_lea.sflag [#allocation4], %s1196_s18  ;;  %s912_s0 = scalar_lea.vmem %s1279_s13, 256 }
  0xef   : > { %p913_p12 = scmp.ne.s32.totalorder %s1279_s13, %s912_s0  ;;  %s1036_s27 = smov [#allocation7]  }
  0xf0   : > { %s916_s21 = sshll.u32 %s1036_s27, 4  ;;  %s917_s21 = int_to_ptr.vmem [resolvable:$false] %s916_s21 }
  0xf1   : > { %p914_p2 = pnand %p913_p12, %p1436_p7  ;;  %s918_s24 = scalar_lea.vmem %s917_s21, 512 }
  0xf2   : > { %p919_p10 = scmp.lt.s32.totalorder %s1279_s13, %s917_s21  ;;  %p920_p8 = scmp.lt.s32.totalorder %s918_s24, %s912_s0 }
  0xf3   : > { %p915_p1 = pneg %p914_p2 }
  0xf4   : > { %p921_p9 = por %p920_p8, %p919_p10 }
  0xf6   : > { %p922_p13 = pnand %p921_p9, %p915_p1 }
  0xf8   : > { %925 = shalt.err (!%p922_p13)
}
  0xf9   : > { %s926_s3 = scalar_lea.hbm %s1277_s17, 256  ;;  %s930_s11 = scalar_lea.hbm %s1407_s4, 512 }
  0xfa   : > { %p927_p4 = scmp.ne.s32.totalorder %s1277_s17, %s926_s3  ;;  %p931_p5 = scmp.lt.s32.totalorder %s1277_s17, %s1407_s4 }
  0xfb   : > { %p932_p0 = scmp.lt.s32.totalorder %s930_s11, %s926_s3 }
  0xfc   : > { %p928_p6 = pnand %p927_p4, %p1436_p7 }
  0xfd   : > { %p933_p3 = por %p932_p0, %p931_p5 }
  0xfe   : > { %p929_p11 = pneg %p928_p6 }
 0x100   : > { %p934_p12 = pnand %p933_p3, %p929_p11 }
 0x102   : > { %937 = shalt.err (!%p934_p12)
}
 0x103   : > { %759 = dma.vmem_to_hbm [thread:$0]  (%p1436_p7), %s1279_s13, 256, %s1277_s17, %s480_s26, %s1034_s30, %s1034_s30, %s1035_s10   ;;  %v476_v62 = vadd.f32 %v474_v55, %v471_v61 }
 0x104   : > { %477 = vst.msk [vmem:[%s1269_s19] sm:$0xff] %vm394_vm0, %v475_v60  ;;  %s1350_s27 = scalar_lea.hbm %s1409_s6, %s1247_s14  ;;  %s938_s21 = scalar_lea.vmem %s1342_s15, 256 }
 0x105   : > { %478 = vst.msk [vmem:[%s1269_s19 + $0x8] sm:$0xff] %vm394_vm0, %v476_v62  ;;  %p939_p2 = scmp.ne.s32.totalorder %s1342_s15, %s938_s21  ;;  %s1037_s13 = smov [#allocation10]  }
 0x106   : > { %s942_s17 = sshll.u32 %s1037_s13, 4  ;;  %s943_s17 = int_to_ptr.vmem [resolvable:$false] %s942_s17 }
 0x107   : > { %p940_p1 = pnand %p939_p2, %p1436_p7  ;;  %s944_s28 = scalar_lea.vmem %s943_s17, 512 }
 0x108   : > { %p945_p8 = scmp.lt.s32.totalorder %s1342_s15, %s943_s17  ;;  %p946_p9 = scmp.lt.s32.totalorder %s944_s28, %s938_s21 }
 0x109   : > { %p941_p10 = pneg %p940_p1 }
 0x10a   : > { %p947_p13 = por %p946_p9, %p945_p8 }
 0x10c   : > { %p948_p4 = pnand %p947_p13, %p941_p10 }
 0x10e   : > { %951 = shalt.err (!%p948_p4)
}
 0x10f   : > { %s952_s14 = scalar_lea.hbm %s1350_s27, 256  ;;  %s956_s24 = scalar_lea.hbm %s1409_s6, 512 }
 0x110   : > { %p953_p6 = scmp.ne.s32.totalorder %s1350_s27, %s952_s14  ;;  %p957_p0 = scmp.lt.s32.totalorder %s1350_s27, %s1409_s6 }
 0x111   : > { %p958_p3 = scmp.lt.s32.totalorder %s956_s24, %s952_s14 }
 0x112   : > { %p954_p11 = pnand %p953_p6, %p1436_p7 }
 0x113   : > { %p959_p12 = por %p958_p3, %p957_p0 }
 0x114   : > { %p955_p5 = pneg %p954_p11 }
 0x116   : > { %p960_p2 = pnand %p959_p12, %p955_p5 }
 0x118   : > { %963 = shalt.err (!%p960_p2)
}
 0x119   : > { %761 = dma.vmem_to_hbm [thread:$0]  (%p1436_p7), %s1342_s15, 256, %s1350_s27, %s1283_s20, %s1034_s30, %s1034_s30, %s1035_s10  }
 0x11a PF: > { %s1437_s29 = sld [smem:[#allocation15_spill]] }
 0x11b   : > { %s1438_s11 = sld [smem:[#allocation17_spill]] }
 0x11c   : > { %s1439_s16 = sld [smem:[#allocation16_spill]] }
 0x120   : > { %s556_s7 = sand.u32 1, %s1437_s29  }
 0x121   : > { %p1440_p1 = scmp.ne.s32.totalorder %s1438_s11, 0  ;;  %s557_s12 = scalar_lea.sflag [#allocation4], %s556_s7 }
 0x122   : > { %p1441_p10 = scmp.ge.s32.totalorder %s1439_s16, 2 }
 0x124   : > { %p774_p8 = pnand %p1441_p10, %p1440_p1 }
 0x126   : > { %p775_p9 = pneg %p774_p8 }
 0x128   : > { %997 = dma.done.wait (%p775_p9), %s557_s12, 256  }
 0x129   : > { %999 = vsyncadd (%p775_p9), %s557_s12, 4294967040  ;;  %s1442_s8 = sadd.s32 4294967294, %s1439_s16  }
 0x12a   : > { %s565_s0 = sand.u32 1, %s1442_s8  }
 0x12b   : > { %s566_s21 = scalar_lea.sflag [#allocation9], %s565_s0 }
 0x12c   : > { %1001 = dma.done.wait (%p775_p9), %s566_s21, 512  }
 0x12d   : > { %1003 = vsyncadd (%p775_p9), %s566_s21, 4294966784  ;;  %s27_s26 = sadd.s32 1, %s1439_s16   ;;  %s1443_s15 = sld [smem:[#allocation18_spill]] }
 0x12e   : > { %p24_p7 = scmp.ge.s32.totalorder %s27_s26, 4   ;;  %s1444_s21 = smov %s1010_s22 }
 0x12f   : > { %s1445_s22 = smov %s1014_s23  ;;  %s1446_s23 = smov %s1183_s9 }
 0x130   : > { %s1447_s24 = smov %s1022_s25  ;;  %26 = sbr.rel (!%p24_p7) target bundleno = 12 (0xc), region = 121 }
 0x133   : > { %s1448_s25 = smov %s1443_s15 }
 0x135   :  { %580 = vsyncpa [#allocation3], 1 }
 0x136   :  { %582 = vsyncpa [#allocation3 + $0x1], 1 }
 0x137   :  { %583 = vsyncpa [#allocation4], 1 }
 0x138   :  { %585 = vsyncpa [#allocation4 + $0x1], 1 }
 0x139   :  { %586 = vsyncpa [#allocation9], 1 }
 0x13a   :  { %588 = vsyncpa [#allocation9 + $0x1], 1 }
 0x13b   :  { %589 = vsyncpa [#allocation5], 1 }
 0x13c   :  { %591 = vsyncpa [#allocation5 + $0x1], 1 }

</bundles_post_ra>
